<compile_context>
chip_gen: v5e
topology: v5e:2x2
jax: 0.10.0
libtpu: 0.0.40
codegen_flags: <defaults>
</compile_context>

<pallas_src>
import functools

import jax
import jax.numpy as jnp
from jax.experimental import pallas as pl
from jax.experimental.pallas import tpu as pltpu

OUT_W = 8   # packed output lane width: [pi0, pi1, vf, 0, 0, 0, 0, 0]
HID = 128   # padded lane width for the head stages


def _round_up(n, m):
    return ((n + m - 1) // m) * m


def _mlp_extractor_kernel(
    x_ref,                   # (TB, D)      native dtype (f32 or bf16)
    w_sh_ref, b_sh_ref,      # (D, 128) bf16 / (1, 128) f32
    w_h_ref, b_h_ref,        # (128, 128) bf16 / (1, 128) f32   [p1 | v1 | 0]
    w_2_ref, b_2_ref,        # (128, 128) bf16 / (1, 128) f32   blockdiag(p2, v2)
    w_3_ref, b_3_ref,        # (128, 8)   f32 / (1, 8)   f32    p3 + value routing
    out_ref,                 # (TB, OUT_W) f32
):
    # Cast in-kernel: avoids a separate wrapper pass over x (kernel is x-read bound).
    x = x_ref[...].astype(jnp.bfloat16)

    # shared_net: Linear(D,128) + ReLU
    h = jnp.dot(x, w_sh_ref[...], preferred_element_type=jnp.float32) + b_sh_ref[...]
    h = jnp.maximum(h, 0.0).astype(jnp.bfloat16)

    # fused first layers of both heads: cols 0:64 = p1, 64:96 = v1, 96:128 = 0
    hv = jnp.dot(h, w_h_ref[...], preferred_element_type=jnp.float32) + b_h_ref[...]
    hv = jnp.maximum(hv, 0.0).astype(jnp.bfloat16)

    # block-diagonal second layers: cols 0:32 = p1@Wp2+bp2, col 32 = v1@Wv2+bv2
    z = jnp.dot(hv, w_2_ref[...], preferred_element_type=jnp.float32) + b_2_ref[...]
    lane = jax.lax.broadcasted_iota(jnp.int32, z.shape, dimension=1)
    t = jnp.where(lane < 32, jnp.maximum(z, 0.0), z)   # ReLU on policy cols only

    # routing matmul (f32 to keep the value exact): cols 0:2 = p2@Wp3+bp3, col 2 = value
    u = jnp.dot(t, w_3_ref[...], preferred_element_type=jnp.float32) + b_3_ref[...]
    lane_o = jax.lax.broadcasted_iota(jnp.int32, u.shape, dimension=1)
    out_ref[...] = jnp.where(lane_o < 2, jax.nn.sigmoid(u), u).astype(out_ref.dtype)


def pack_params(params):
    """Build lane-aligned fused weights; matmul weights bf16 (biases + routing f32)."""
    (w_sh, b_sh, w_p1, b_p1, w_p2, b_p2, w_p3, b_p3,
     w_v1, b_v1, w_v2, b_v2) = params
    f32, bf = jnp.float32, jnp.bfloat16

    # fused first head layers, zero-padded to a full 128-lane group
    w_h = jnp.zeros((128, HID), f32).at[:, 0:64].set(w_p1).at[:, 64:96].set(w_v1)
    b_h = jnp.zeros((1, HID), f32).at[:, 0:64].set(b_p1).at[:, 64:96].set(b_v1)

    # block-diagonal second layers: policy 64->32 in cols 0:32, value 32->1 in col 32
    w_2 = jnp.zeros((HID, HID), f32).at[0:64, 0:32].set(w_p2).at[64:96, 32:33].set(w_v2)
    b_2 = jnp.zeros((1, HID), f32).at[:, 0:32].set(b_p2).at[:, 32:33].set(b_v2)

    # routing layer: policy logits into cols 0:2, identity column carries value to col 2
    w_3 = jnp.zeros((HID, OUT_W), f32).at[0:32, 0:2].set(w_p3).at[32, 2].set(1.0)
    b_3 = jnp.zeros((1, OUT_W), f32).at[:, 0:2].set(b_p3)

    return (
        w_sh.astype(bf), b_sh.astype(f32),
        w_h.astype(bf), b_h,
        w_2.astype(bf), b_2,
        w_3, b_3,                      # kept f32: exact value pass-through
    )


@functools.partial(jax.jit, static_argnames=("tile_b",))
def mlp_extractor_forward(x, packed_params, *, tile_b=2048):
    # mirror the PyTorch `if x.dim() == 1: x = x.unsqueeze(0)` behaviour
    if x.ndim == 1:
        x = x[None, :]
    B, D = x.shape

    # Batch tile: multiple of 16, capped at ~ceil(B/2) so large-B runs get >=2
    # grid steps (both v7x TensorCores active). Ragged last block is masked by
    # Pallas (no wrapper-side padding pass over x).
    half = _round_up(max(pl.cdiv(B, 2), 1), 16)
    TB = max(16, min(_round_up(tile_b, 16), half))
    grid = (pl.cdiv(B, TB),)

    def const_map(i):
        return (0, 0)

    in_specs = [pl.BlockSpec((TB, D), lambda i: (i, 0))]
    in_specs += [pl.BlockSpec(p.shape, const_map) for p in packed_params]
    out_specs = pl.BlockSpec((TB, OUT_W), lambda i: (i, 0))

    weight_bytes = sum(int(p.size) * p.dtype.itemsize for p in packed_params)
    flops = 2 * B * (D * 128 + 128 * HID + HID * HID + HID * OUT_W)
    cost = pl.CostEstimate(
        flops=flops,
        transcendentals=2 * B,  # sigmoid on (B, 2)
        bytes_accessed=B * D * x.dtype.itemsize + weight_bytes + B * OUT_W * 4,
    )

    out = pl.pallas_call(
        _mlp_extractor_kernel,
        out_shape=jax.ShapeDtypeStruct((B, OUT_W), jnp.float32),
        grid=grid,
        in_specs=in_specs,
        out_specs=out_specs,
        compiler_params=pltpu.CompilerParams(
            dimension_semantics=("parallel",),
            vmem_limit_bytes=32 * 1024 * 1024,
        ),
        cost_estimate=cost,
    )(x, *packed_params)

    pi = out[:, 0:2]
    vf = out[:, 2:3]
    return pi, vf


def init_params(input_dim, key):
    """Deterministic synthetic parameters; weights stored as (in, out)."""
    keys = jax.random.split(key, 12)

    def lin(kw, kb, fan_in, fan_out):
        bound = 1.0 / jnp.sqrt(fan_in)
        w = jax.random.uniform(kw, (fan_in, fan_out), jnp.float32, -bound, bound)
        b = jax.random.uniform(kb, (1, fan_out), jnp.float32, -bound, bound)
        return w, b

    w_sh, b_sh = lin(keys[0], keys[1], input_dim, 128)   # shared_net
    w_p1, b_p1 = lin(keys[2], keys[3], 128, 64)          # policy_net layer 1
    w_p2, b_p2 = lin(keys[4], keys[5], 64, 32)           # policy_net layer 2
    w_p3, b_p3 = lin(keys[6], keys[7], 32, 2)            # policy_net layer 3
    w_v1, b_v1 = lin(keys[8], keys[9], 128, 32)          # value_net layer 1
    w_v2, b_v2 = lin(keys[10], keys[11], 32, 1)          # value_net layer 2
    return (w_sh, b_sh, w_p1, b_p1, w_p2, b_p2, w_p3, b_p3,
            w_v1, b_v1, w_v2, b_v2)


def reference_forward(x, params):
    """Pure-JAX f32 reference of the PyTorch forward."""
    (w_sh, b_sh, w_p1, b_p1, w_p2, b_p2, w_p3, b_p3,
     w_v1, b_v1, w_v2, b_v2) = params
    if x.ndim == 1:
        x = x[None, :]
    h = jax.nn.relu(x @ w_sh + b_sh)
    p = jax.nn.relu(h @ w_p1 + b_p1)
    p = jax.nn.relu(p @ w_p2 + b_p2)
    p = jax.nn.sigmoid(p @ w_p3 + b_p3)
    v = jax.nn.relu(h @ w_v1 + b_v1)
    v = v @ w_v2 + b_v2
    return p, v


if __name__ == "__main__":
    input_dim = 128
    batch = 2

    key = jax.random.PRNGKey(0)
    k_x, k_p = jax.random.split(key)
    x = jax.random.normal(k_x, (batch, input_dim), jnp.float32)
    params = init_params(input_dim, k_p)
    packed = pack_params(params)

    pi, vf = mlp_extractor_forward(x, packed)
    jax.block_until_ready((pi, vf))

    pi_ref, vf_ref = reference_forward(x, params)
    assert pi.shape == (batch, 2) and vf.shape == (batch, 1)
    # bf16 matmul inputs (f32 accumulate) vs f32 reference -> loose tolerance
    assert jnp.allclose(pi, pi_ref, atol=5e-2, rtol=5e-2)
    assert jnp.allclose(vf, vf_ref, atol=5e-2, rtol=5e-2)

    print("KERNEL_OK")
</pallas_src>

<mosaic_0001>
module attributes {stable_mosaic.version = 11 : i64} {
  func.func @_mlp_extractor_kernel(%arg0: i32, %arg1: memref<16x128xf32, #tpu.memory_space<vmem>>, %arg2: memref<128x128xbf16, #tpu.memory_space<vmem>>, %arg3: memref<1x128xf32, #tpu.memory_space<vmem>>, %arg4: memref<128x128xbf16, #tpu.memory_space<vmem>>, %arg5: memref<1x128xf32, #tpu.memory_space<vmem>>, %arg6: memref<128x128xbf16, #tpu.memory_space<vmem>>, %arg7: memref<1x128xf32, #tpu.memory_space<vmem>>, %arg8: memref<128x8xf32, #tpu.memory_space<vmem>>, %arg9: memref<1x8xf32, #tpu.memory_space<vmem>>, %arg10: memref<16x8xf32, #tpu.memory_space<vmem>>) attributes {dimension_semantics = [#tpu.dimension_semantics<parallel>], iteration_bounds = array<i64: 1>, scalar_prefetch = 0 : i64, scratch_operands = 0 : i64, tpu.core_type = #tpu.core_type<tc>, window_params = [{transform_indices = @transform_0, window_bounds = array<i64: 16, 128>}, {pipeline_mode = #tpu.pipeline_mode<synchronous>, transform_indices = @transform_1, window_bounds = array<i64: 128, 128>}, {pipeline_mode = #tpu.pipeline_mode<synchronous>, transform_indices = @transform_2, window_bounds = array<i64: 1, 128>}, {pipeline_mode = #tpu.pipeline_mode<synchronous>, transform_indices = @transform_3, window_bounds = array<i64: 128, 128>}, {pipeline_mode = #tpu.pipeline_mode<synchronous>, transform_indices = @transform_4, window_bounds = array<i64: 1, 128>}, {pipeline_mode = #tpu.pipeline_mode<synchronous>, transform_indices = @transform_5, window_bounds = array<i64: 128, 128>}, {pipeline_mode = #tpu.pipeline_mode<synchronous>, transform_indices = @transform_6, window_bounds = array<i64: 1, 128>}, {pipeline_mode = #tpu.pipeline_mode<synchronous>, transform_indices = @transform_7, window_bounds = array<i64: 128, 8>}, {pipeline_mode = #tpu.pipeline_mode<synchronous>, transform_indices = @transform_8, window_bounds = array<i64: 1, 8>}, {transform_indices = @transform_9, window_bounds = array<i64: 16, 8>}]} {
    %c0 = arith.constant 0 : index
    %c0_0 = arith.constant 0 : index
    %0 = vector.load %arg1[%c0, %c0_0] : memref<16x128xf32, #tpu.memory_space<vmem>>, vector<16x128xf32>
    %1 = arith.truncf %0 : vector<16x128xf32> to vector<16x128xbf16>
    %c0_1 = arith.constant 0 : index
    %c0_2 = arith.constant 0 : index
    %2 = vector.load %arg2[%c0_1, %c0_2] : memref<128x128xbf16, #tpu.memory_space<vmem>>, vector<128x128xbf16>
    %cst = arith.constant dense<0.000000e+00> : vector<16x128xf32>
    %3 = tpu.matmul %1, %2, %cst {dimension_numbers = #tpu.dot_dimension_numbers<[1], [0], [0], [1], [0, 0, 1, 1], [], []>} : vector<16x128xbf16>, vector<128x128xbf16>, vector<16x128xf32> -> vector<16x128xf32>
    %c0_3 = arith.constant 0 : index
    %c0_4 = arith.constant 0 : index
    %4 = vector.load %arg3[%c0_3, %c0_4] : memref<1x128xf32, #tpu.memory_space<vmem>>, vector<1x128xf32>
    %5 = vector.broadcast %4 : vector<1x128xf32> to vector<16x128xf32>
    %6 = arith.addf %3, %5 : vector<16x128xf32>
    %cst_5 = arith.constant 0.000000e+00 : f32
    %7 = vector.broadcast %cst_5 : f32 to vector<16x128xf32>
    %8 = arith.maximumf %6, %7 : vector<16x128xf32>
    %9 = arith.truncf %8 : vector<16x128xf32> to vector<16x128xbf16>
    %c0_6 = arith.constant 0 : index
    %c0_7 = arith.constant 0 : index
    %10 = vector.load %arg4[%c0_6, %c0_7] : memref<128x128xbf16, #tpu.memory_space<vmem>>, vector<128x128xbf16>
    %cst_8 = arith.constant dense<0.000000e+00> : vector<16x128xf32>
    %11 = tpu.matmul %9, %10, %cst_8 {dimension_numbers = #tpu.dot_dimension_numbers<[1], [0], [0], [1], [0, 0, 1, 1], [], []>} : vector<16x128xbf16>, vector<128x128xbf16>, vector<16x128xf32> -> vector<16x128xf32>
    %c0_9 = arith.constant 0 : index
    %c0_10 = arith.constant 0 : index
    %12 = vector.load %arg5[%c0_9, %c0_10] : memref<1x128xf32, #tpu.memory_space<vmem>>, vector<1x128xf32>
    %13 = vector.broadcast %12 : vector<1x128xf32> to vector<16x128xf32>
    %14 = arith.addf %11, %13 : vector<16x128xf32>
    %cst_11 = arith.constant 0.000000e+00 : f32
    %15 = vector.broadcast %cst_11 : f32 to vector<16x128xf32>
    %16 = arith.maximumf %14, %15 : vector<16x128xf32>
    %17 = arith.truncf %16 : vector<16x128xf32> to vector<16x128xbf16>
    %c0_12 = arith.constant 0 : index
    %c0_13 = arith.constant 0 : index
    %18 = vector.load %arg6[%c0_12, %c0_13] : memref<128x128xbf16, #tpu.memory_space<vmem>>, vector<128x128xbf16>
    %cst_14 = arith.constant dense<0.000000e+00> : vector<16x128xf32>
    %19 = tpu.matmul %17, %18, %cst_14 {dimension_numbers = #tpu.dot_dimension_numbers<[1], [0], [0], [1], [0, 0, 1, 1], [], []>} : vector<16x128xbf16>, vector<128x128xbf16>, vector<16x128xf32> -> vector<16x128xf32>
    %c0_15 = arith.constant 0 : index
    %c0_16 = arith.constant 0 : index
    %20 = vector.load %arg7[%c0_15, %c0_16] : memref<1x128xf32, #tpu.memory_space<vmem>>, vector<1x128xf32>
    %21 = vector.broadcast %20 : vector<1x128xf32> to vector<16x128xf32>
    %22 = arith.addf %19, %21 : vector<16x128xf32>
    %23 = tpu.iota {dimensions = array<i32: 1>} : vector<16x128xi32>
    %c32_i32 = arith.constant 32 : i32
    %24 = vector.broadcast %c32_i32 : i32 to vector<16x128xi32>
    %25 = arith.cmpi slt, %23, %24 : vector<16x128xi32>
    %cst_17 = arith.constant 0.000000e+00 : f32
    %26 = vector.broadcast %cst_17 : f32 to vector<16x128xf32>
    %27 = arith.maximumf %22, %26 : vector<16x128xf32>
    %28 = arith.select %25, %27, %22 : vector<16x128xi1>, vector<16x128xf32>
    %c0_18 = arith.constant 0 : index
    %c0_19 = arith.constant 0 : index
    %29 = vector.load %arg8[%c0_18, %c0_19] : memref<128x8xf32, #tpu.memory_space<vmem>>, vector<128x8xf32>
    %cst_20 = arith.constant dense<0.000000e+00> : vector<16x8xf32>
    %30 = tpu.matmul %28, %29, %cst_20 {dimension_numbers = #tpu.dot_dimension_numbers<[1], [0], [0], [1], [0, 0, 1, 1], [], []>} : vector<16x128xf32>, vector<128x8xf32>, vector<16x8xf32> -> vector<16x8xf32>
    %c0_21 = arith.constant 0 : index
    %c0_22 = arith.constant 0 : index
    %31 = vector.load %arg9[%c0_21, %c0_22] : memref<1x8xf32, #tpu.memory_space<vmem>>, vector<1x8xf32>
    %32 = vector.broadcast %31 : vector<1x8xf32> to vector<16x8xf32>
    %33 = arith.addf %30, %32 : vector<16x8xf32>
    %34 = tpu.iota {dimensions = array<i32: 1>} : vector<16x8xi32>
    %c2_i32 = arith.constant 2 : i32
    %35 = vector.broadcast %c2_i32 : i32 to vector<16x8xi32>
    %36 = arith.cmpi slt, %34, %35 : vector<16x8xi32>
    %37 = arith.negf %33 : vector<16x8xf32>
    %38 = math.exp %37 : vector<16x8xf32>
    %cst_23 = arith.constant 1.000000e+00 : f32
    %39 = vector.broadcast %cst_23 : f32 to vector<16x8xf32>
    %40 = arith.addf %39, %38 : vector<16x8xf32>
    %41 = arith.divf %39, %40 : vector<16x8xf32>
    %42 = arith.select %36, %41, %33 : vector<16x8xi1>, vector<16x8xf32>
    %c0_24 = arith.constant 0 : index
    %c0_25 = arith.constant 0 : index
    %43 = vector.load %arg10[%c0_24, %c0_25] : memref<16x8xf32, #tpu.memory_space<vmem>>, vector<16x8xf32>
    tpu.vector_store %arg10[%c0_24, %c0_25], %42 {strides = array<i32>} : memref<16x8xf32, #tpu.memory_space<vmem>>, vector<16x8xf32>,
    return
  }
  func.func @transform_0(%arg0: i32) -> (i32, i32) {
    %c0_i32 = arith.constant 0 : i32
    %c0_i32_0 = arith.constant 0 : i32
    return %arg0, %c0_i32 : i32, i32
  }
  func.func @transform_1(%arg0: i32) -> (i32, i32) {
    %c0_i32 = arith.constant 0 : i32
    %c0_i32_0 = arith.constant 0 : i32
    %c0_i32_1 = arith.constant 0 : i32
    return %c0_i32, %c0_i32_0 : i32, i32
  }
  func.func @transform_2(%arg0: i32) -> (i32, i32) {
    %c0_i32 = arith.constant 0 : i32
    %c0_i32_0 = arith.constant 0 : i32
    %c0_i32_1 = arith.constant 0 : i32
    return %c0_i32, %c0_i32_0 : i32, i32
  }
  func.func @transform_3(%arg0: i32) -> (i32, i32) {
    %c0_i32 = arith.constant 0 : i32
    %c0_i32_0 = arith.constant 0 : i32
    %c0_i32_1 = arith.constant 0 : i32
    return %c0_i32, %c0_i32_0 : i32, i32
  }
  func.func @transform_4(%arg0: i32) -> (i32, i32) {
    %c0_i32 = arith.constant 0 : i32
    %c0_i32_0 = arith.constant 0 : i32
    %c0_i32_1 = arith.constant 0 : i32
    return %c0_i32, %c0_i32_0 : i32, i32
  }
  func.func @transform_5(%arg0: i32) -> (i32, i32) {
    %c0_i32 = arith.constant 0 : i32
    %c0_i32_0 = arith.constant 0 : i32
    %c0_i32_1 = arith.constant 0 : i32
    return %c0_i32, %c0_i32_0 : i32, i32
  }
  func.func @transform_6(%arg0: i32) -> (i32, i32) {
    %c0_i32 = arith.constant 0 : i32
    %c0_i32_0 = arith.constant 0 : i32
    %c0_i32_1 = arith.constant 0 : i32
    return %c0_i32, %c0_i32_0 : i32, i32
  }
  func.func @transform_7(%arg0: i32) -> (i32, i32) {
    %c0_i32 = arith.constant 0 : i32
    %c0_i32_0 = arith.constant 0 : i32
    %c0_i32_1 = arith.constant 0 : i32
    return %c0_i32, %c0_i32_0 : i32, i32
  }
  func.func @transform_8(%arg0: i32) -> (i32, i32) {
    %c0_i32 = arith.constant 0 : i32
    %c0_i32_0 = arith.constant 0 : i32
    %c0_i32_1 = arith.constant 0 : i32
    return %c0_i32, %c0_i32_0 : i32, i32
  }
  func.func @transform_9(%arg0: i32) -> (i32, i32) {
    %c0_i32 = arith.constant 0 : i32
    %c0_i32_0 = arith.constant 0 : i32
    return %arg0, %c0_i32 : i32, i32
  }
}

</mosaic_0001>

<bundles_post_ra>
// kernel: mlp_extractor_forward.1
= control target key start
LH: loop header
LB: loop body
LE: loop exit
PB: predicated region body
PF: predicated region fallthrough
CT: control target
= control target key end

     0   :  { %14 = vsyncpa [#allocation3], 0  ;;  %s602_s12 = smov [#allocation2]   ;;  %s603_s14 = smov 64   ;;  %s775_s0 = inlined_call_operand.vmem [shape: f32[2,128], index: 0, kind: input, shape index: {}]   ;;  %s776_s1 = inlined_call_operand.vmem [shape: bf16[128,128], index: 1, kind: input, shape index: {}]   ;;  %s777_s2 = inlined_call_operand.vmem [shape: f32[1,128], index: 2, kind: input, shape index: {}]   ;;  %s778_s3 = inlined_call_operand.vmem [shape: bf16[128,128], index: 3, kind: input, shape index: {}]   ;;  %s779_s4 = inlined_call_operand.vmem [shape: f32[1,128], index: 4, kind: input, shape index: {}]   ;;  %s780_s5 = inlined_call_operand.hbm [shape: bf16[128,128], index: 5, kind: input, shape index: {}]   ;;  %s781_s6 = inlined_call_operand.vmem [shape: f32[1,128], index: 6, kind: input, shape index: {}]   ;;  %s782_s7 = inlined_call_operand.vmem [shape: f32[128,8], index: 7, kind: input, shape index: {}]   ;;  %s783_s8 = inlined_call_operand.vmem [shape: f32[1,8], index: 8, kind: input, shape index: {}]   ;;  %s784_s9 = inlined_call_operand.vmem [shape: f32[2,8], index: 9, kind: output, shape index: {}]  }
   0x1   :  { %s29_s11 = sshll.u32 %s780_s5, 4  ;;  %s31_s13 = sshll.u32 %s602_s12, 4  ;;  %s30_s11 = int_to_ptr.hbm [resolvable:$true] %s29_s11  ;;  %s32_s13 = int_to_ptr.vmem [resolvable:$true] %s31_s13 }
   0x2   :  { %s604_s15 = smov 4  }
   0x3   :  { %37 = dma.hbm_to_vmem [thread:$0]  %s30_s11, 1024, %s32_s13, [#allocation3], %s603_s14, %s603_s14, %s604_s15  }
   0x4   :  { %600 = dma.done.wait [#allocation3], 1024  }
   0x5   :  { %601 = vsyncadd [#allocation3], 4294966272  ;;  %v544_v0 = vld [vmem:[%s776_s1 + $0x38] sm:$0xff]  ;;  %v543_v1 = vld [vmem:[%s776_s1 + $0x30] sm:$0xff]  ;;  %v303_v59 = vlaneseq  ;;  %vm394_vm6 = vcmask 64512  }
   0x6   :  { %119 = vmatpush.bf16.msra.mxu0 %v544_v0  ;;  %v552_v2 = vld [vmem:[%s778_s3 + $0x38] sm:$0xff]  ;;  %v551_v3 = vld [vmem:[%s778_s3 + $0x30] sm:$0xff]  ;;  %v542_v4 = vld [vmem:[%s776_s1 + $0x28] sm:$0xff] }
   0x7   :  { %204 = vmatpush.bf16.msra.mxu1 %v552_v2  ;;  %v550_v5 = vld [vmem:[%s778_s3 + $0x28] sm:$0xff]  ;;  %v541_v6 = vld [vmem:[%s776_s1 + $0x20] sm:$0xff]  ;;  %v540_v8 = vld [vmem:[%s776_s1 + $0x18] sm:$0xff]  ;;  %v304_v61 = vand.u32 127, %v303_v59 }
   0x8   :  { %v549_v7 = vld [vmem:[%s778_s3 + $0x20] sm:$0xff]  ;;  %v539_v9 = vld [vmem:[%s776_s1 + $0x10] sm:$0xff]  ;;  %v538_v10 = vld [vmem:[%s776_s1 + $0x8] sm:$0xff] }
   0x9   :  { %v537_v11 = vld [vmem:[%s776_s1] sm:$0xff]  ;;  %v49_v13 = vld [vmem:[%s775_s0 + $0x8] sm:$0xff]  ;;  %v548_v15 = vld [vmem:[%s778_s3 + $0x18] sm:$0xff]  ;;  %vm305_vm0 = vcmp.lt.s32.totalorder %v304_v61, 32  ;;  %vm353_vm3 = vcmp.lt.s32.totalorder %v304_v61, 2 }
   0xa   :  { %120 = vmatpush.bf16.msra.mxu0 %v543_v1  ;;  %v48_v12 = vld [vmem:[%s775_s0] sm:$0xff]  ;;  %v547_v16 = vld [vmem:[%s778_s3 + $0x10] sm:$0xff]  ;;  %v546_v17 = vld [vmem:[%s778_s3 + $0x8] sm:$0xff] }
   0xb   :  { %205 = vmatpush.bf16.msra.mxu1 %v551_v3  ;;  %v50_v14 = vpack.c.bf16 %v49_v13, %v48_v12  ;;  %v545_v18 = vld [vmem:[%s778_s3] sm:$0xff]  ;;  %v560_v19 = vld [vmem:[#allocation2 + $0x38] sm:$0xff]  ;;  %v559_v20 = vld [vmem:[#allocation2 + $0x30] sm:$0xff] }
   0xc   :  { %289 = vmatpush.bf16.msra.mxu2 %v560_v19  ;;  %v558_v21 = vld [vmem:[#allocation2 + $0x28] sm:$0xff]  ;;  %v557_v22 = vld [vmem:[#allocation2 + $0x20] sm:$0xff]  ;;  %v556_v31 = vld [vmem:[#allocation2 + $0x18] sm:$0xff] }
   0xd   :  { %v564_v24 = vld [vmem:[%s777_s2] ss:$0 sm:$0xff]  ;;  %v555_v32 = vld [vmem:[#allocation2 + $0x10] sm:$0xff]  ;;  %v554_v33 = vld [vmem:[#allocation2 + $0x8] sm:$0xff] }
   0xe   :  { %121 = vmatpush.bf16.msra.mxu0 %v542_v4  ;;  %v553_v34 = vld [vmem:[#allocation2] sm:$0xff]  ;;  %v325_v35 = vld [vmem:[%s782_s7 + $0x78] sm:$0xff]  ;;  %v324_v36 = vld [vmem:[%s782_s7 + $0x70] sm:$0xff] }
   0xf   :  { %206 = vmatpush.bf16.msra.mxu1 %v550_v5  ;;  %330 = vmatpush.msra.mxu3 %v325_v35  ;;  %v323_v37 = vld [vmem:[%s782_s7 + $0x68] sm:$0xff]  ;;  %v322_v38 = vld [vmem:[%s782_s7 + $0x60] sm:$0xff]  ;;  %v321_v39 = vld [vmem:[%s782_s7 + $0x58] sm:$0xff] }
  0x10   :  { %290 = vmatpush.bf16.msra.mxu2 %v559_v20  ;;  %v320_v40 = vld [vmem:[%s782_s7 + $0x50] sm:$0xff]  ;;  %v319_v41 = vld [vmem:[%s782_s7 + $0x48] sm:$0xff]  ;;  %v318_v42 = vld [vmem:[%s782_s7 + $0x40] sm:$0xff] }
  0x11   :  { %331 = vmatpush.msra.mxu3 %v324_v36  ;;  %v317_v43 = vld [vmem:[%s782_s7 + $0x38] sm:$0xff]  ;;  %v316_v44 = vld [vmem:[%s782_s7 + $0x30] sm:$0xff]  ;;  %v315_v46 = vld [vmem:[%s782_s7 + $0x28] sm:$0xff] }
  0x12   :  { %122 = vmatpush.bf16.msra.mxu0 %v541_v6  ;;  %v565_v47 = vld [vmem:[%s779_s4] ss:$0 sm:$0xff]  ;;  %v313_v49 = vld [vmem:[%s782_s7 + $0x18] sm:$0xff]  ;;  %v312_v56 = vld [vmem:[%s782_s7 + $0x10] sm:$0xff] }
  0x13   :  { %207 = vmatpush.bf16.msra.mxu1 %v549_v7  ;;  %332 = vmatpush.msra.mxu3 %v323_v37  ;;  %v314_v48 = vld [vmem:[%s782_s7 + $0x20] sm:$0xff]  ;;  %v311_v57 = vld [vmem:[%s782_s7 + $0x8] sm:$0xff] }
  0x14   :  { %291 = vmatpush.bf16.msra.mxu2 %v558_v21  ;;  %v310_v58 = vld [vmem:[%s782_s7] sm:$0xff] }
  0x15   :  { %333 = vmatpush.msra.mxu3 %v322_v38  ;;  %v566_v60 = vld [vmem:[%s781_s6] ss:$0 sm:$0xff] }
  0x16   :  { %123 = vmatpush.bf16.msra.mxu0 %v540_v8  ;;  %v567_v6 = vld [vmem:[%s783_s8] ss:$0 sm:$0xff] }
  0x17   :  { %208 = vmatpush.bf16.msra.mxu1 %v548_v15  ;;  %334 = vmatpush.msra.mxu3 %v321_v39 }
  0x18   :  { %292 = vmatpush.bf16.msra.mxu2 %v557_v22 }
  0x19   :  { %335 = vmatpush.msra.mxu3 %v320_v40 }
  0x1a   :  { %124 = vmatpush.bf16.msra.mxu0 %v539_v9 }
  0x1b   :  { %209 = vmatpush.bf16.msra.mxu1 %v547_v16  ;;  %336 = vmatpush.msra.mxu3 %v319_v41 }
  0x1c   :  { %293 = vmatpush.bf16.msra.mxu2 %v556_v31 }
  0x1d   :  { %337 = vmatpush.msra.mxu3 %v318_v42 }
  0x1e   :  { %125 = vmatpush.bf16.msra.mxu0 %v538_v10 }
  0x1f   :  { %210 = vmatpush.bf16.msra.mxu1 %v546_v17  ;;  %338 = vmatpush.msra.mxu3 %v317_v43 }
  0x20   :  { %294 = vmatpush.bf16.msra.mxu2 %v555_v32 }
  0x21   :  { %339 = vmatpush.msra.mxu3 %v316_v44 }
  0x22   :  { %126 = vmatpush.bf16.msra.mxu0 %v537_v11 }
  0x23   :  { %211 = vmatpush.bf16.msra.mxu1 %v545_v18  ;;  %340 = vmatpush.msra.mxu3 %v315_v46 }
  0x24   :  { %295 = vmatpush.bf16.msra.mxu2 %v554_v33 }
  0x25   :  { %127 = vmatmul.bf16.vlgmr.msra.gmra.mxu0 %v50_v14  ;;  %341 = vmatpush.msra.mxu3 %v314_v48 }
  0x27   :  { %342 = vmatpush.msra.mxu3 %v313_v49 }
  0x28   :  { %296 = vmatpush.bf16.msra.mxu2 %v553_v34 }
  0x29   :  { %343 = vmatpush.msra.mxu3 %v312_v56 }
  0x2b   :  { %344 = vmatpush.msra.mxu3 %v311_v57 }
  0x2d   :  { %345 = vmatpush.msra.mxu3 %v310_v58 }
  0xa2   :  { %v128_v23 = vpop.f32.mrf.mxu0 }
  0xa3   :  { %v129_v25 = vadd.f32 %v564_v24, %v128_v23 }
  0xa5   :  { %v133_v28 = vmax.f32 %v129_v25, 0.0 }
  0xaa   :  { %v130_v26 = vpop.f32.mrf.mxu0 }
  0xab   :  { %v131_v27 = vadd.f32 %v564_v24, %v130_v26 }
  0xad   :  { %v134_v29 = vmax.f32 %v131_v27, 0.0 }
  0xaf   :  { %v135_v30 = vpack.c.bf16 %v134_v29, %v133_v28 }
  0xb1   :  { %212 = vmatmul.bf16.vlgmr.msra.gmra.mxu1 %v135_v30 }
 0x12e   :  { %v213_v45 = vpop.f32.mrf.mxu1 }
 0x12f   :  { %v214_v50 = vadd.f32 %v565_v47, %v213_v45 }
 0x131   :  { %v218_v53 = vmax.f32 %v214_v50, 0.0 }
 0x136   :  { %v215_v51 = vpop.f32.mrf.mxu1 }
 0x137   :  { %v216_v52 = vadd.f32 %v565_v47, %v215_v51 }
 0x139   :  { %v219_v54 = vmax.f32 %v216_v52, 0.0 }
 0x13b   :  { %v220_v55 = vpack.c.bf16 %v219_v54, %v218_v53 }
 0x13d   :  { %297 = vmatmul.bf16.vlgmr.msra.gmra.mxu2 %v220_v55 }
 0x1c0   :  { %v298_v62 = vpop.f32.mrf.mxu2 }
 0x1c1   :  { %v299_v63 = vadd.f32 %v566_v60, %v298_v62 }
 0x1c3   :  { %v306_v0 = vmax.f32 %v299_v63, 0.0 }
 0x1c5   :  { %v308_v1 = vsel %vm305_vm0, %v306_v0, %v299_v63 }
 0x1c6   :  { %346 = vmatmul.f32.vlgmr.msra.gmra.mxu3 %v308_v1 }
 0x1c8   :  { %v300_v2 = vpop.f32.mrf.mxu2 }
 0x1c9   :  { %v301_v3 = vadd.f32 %v566_v60, %v300_v2 }
 0x1cb   :  { %v307_v4 = vmax.f32 %v301_v3, 0.0 }
 0x1cd   :  { %v309_v5 = vsel %vm305_vm0, %v307_v4, %v301_v3 }
 0x1ce   :  { %349 = vmatmul.f32.gmra.mxu3 %v309_v5 }
 0x249   :  { %v347_v7 = vpop.f32.mrf.mxu3 }
 0x24a   :  { %v348_v8 = vadd.f32 %v567_v6, %v347_v7 }
 0x24c   :  { %v535_v9 = vmul.f32 -1.442695, %v348_v8 }
 0x24e   :  { %568 = vpow2.f32 %v535_v9 }
 0x251   :  { %v350_v10 = vpop.f32.mrf.mxu3 }
 0x252   :  { %v351_v11 = vadd.f32 %v567_v6, %v350_v10 }
 0x254   :  { %v569_v12 = vpop.eup %568  ;;  %v536_v13 = vmul.f32 -1.442695, %v351_v11 }
 0x255   :  { %v360_v14 = vadd.f32 1.0, %v569_v12 }
 0x256   :  { %570 = vpow2.f32 %v536_v13 }
 0x257   :  { %572 = vrcp.f32 %v360_v14  ;;  %v373_v20 = vand.u32 2147483648, %v360_v14  ;;  %v371_v22 = vand.u32 2147483647, %v360_v14  ;;  %vm367_vm2 = vweird.f32 %v360_v14 }
 0x259   :  { %v374_v25 = vor.u32 1.1754944e-38, %v373_v20  ;;  %vm372_vm5 = vcmp.eq.f32.partialorder %v371_v22, 8.507059e+37 }
 0x25c   :  { %v571_v15 = vpop.eup %570 }
 0x25d   :  { %v573_v16 = vpop.eup %572  ;;  %v361_v17 = vadd.f32 1.0, %v571_v15 }
 0x25e   :  { %v363_v18 = vmul.f32 %v573_v16, %v360_v14  ;;  %vm368_vm1 = vweird.f32 %v573_v16 }
 0x25f   :  { %574 = vrcp.f32 %v361_v17  ;;  %vm369_vm4 = vmor %vm367_vm2, %vm368_vm1 }
 0x260   :  { %v364_v19 = vsub.f32 1.0, %v363_v18 }
 0x262   :  { %v365_v21 = vmul.f32 %v573_v16, %v364_v19 }
 0x264   :  { %v366_v23 = vadd.f32 %v573_v16, %v365_v21 }
 0x265   :  { %v575_v24 = vpop.eup %574 }
 0x266   :  { %v370_v26 = vsel %vm369_vm4, %v573_v16, %v366_v23 }
 0x267   :  { %v375_v27 = vsel %vm372_vm5, %v374_v25, %v370_v26 }
 0x268   :  { %v392_v28 = vsel %vm353_vm3, %v375_v27, %v348_v8 }
 0x269   :  { %395 = vst.msk [vmem:[#allocation4] sm:$0xff] %vm394_vm6, %v392_v28 }
 0x270   :  { %v415_v29 = vld [vmem:[#allocation4] sm:$0x3] }
 0x271   :  { %416 = vst [vmem:[%s784_s9] sm:$0x3] %v415_v29 }
 0x272   :  { %434 = vsyncpa [#allocation3], 1 }

</bundles_post_ra>
